<compile_context>
chip_gen: v7x
topology: tpu7x:2x2x1
jax: 0.10.0
libtpu: 0.0.40
codegen_flags: <defaults>
</compile_context>

<pallas_src>
import functools

import jax
import jax.numpy as jnp
from jax.experimental import pallas as pl
from jax.experimental.pallas import tpu as pltpu

_LANE = 128
_SUBLANE = 8


def _round_up(x, m):
    return ((x + m - 1) // m) * m


def _tensorcore_count():
    """2 TensorCores per chip on v7x parts; 1 per device on v2-v6."""
    try:
        kind = jax.devices()[0].device_kind.lower()
    except Exception:
        return 1
    return 2 if "7" in kind else 1


def _plan_row_tile(rows, tm, x_row_bytes, cout, out_itemsize, row_multiple):
    """Pick the per-grid-step row tile and an explicit scoped-VMEM limit.

    `x_row_bytes` is the lane/sublane-padded VMEM bytes contributed by one
    output row of the streamed input block.  Input and output tiles are
    double-buffered by the pipeline, and the f32 pre-sigmoid intermediate also
    lives in VMEM, so both are budgeted explicitly (keeps v7x's 64 MiB safe).
    """
    out_row_bytes = _round_up(cout, _LANE) * out_itemsize
    f32_row_bytes = _round_up(cout, _LANE) * 4
    per_row_pipe = 2 * (x_row_bytes + out_row_bytes)          # double-buffered
    budget = 16 * 1024 * 1024
    cap = max(row_multiple, (budget // per_row_pipe) // row_multiple * row_multiple)
    tm = min(tm, cap)
    if rows <= tm:
        # One block covers everything.  Split in two only on multi-TensorCore
        # parts and only when each half is large enough to amortize the
        # ~0.35us per-grid-step overhead (avoids a 2x regression on tiny
        # problems on single-core v5e / v6e).
        if _tensorcore_count() >= 2 and rows >= 4096:
            tile = min(rows, _round_up(pl.cdiv(rows, 2), row_multiple))
        else:
            tile = rows
    else:
        tile = (tm // row_multiple) * row_multiple
    vmem_limit = per_row_pipe * tile + 2 * f32_row_bytes * tile + 4 * 1024 * 1024
    vmem_limit = int(min(max(vmem_limit, 16 * 1024 * 1024), 48 * 1024 * 1024))
    return tile, vmem_limit


def _fuse_params(w_pose, b_pose, w_a, b_a):
    """Conv weights (O, A, K, K) -> one (K*K*A, BPP+B) slab; feature ordering
    is (ki, kj, cin), matching the im2col / NCHW reads used by the kernels."""
    _, A, K, _ = w_pose.shape
    kin = K * K * A
    wp = jnp.transpose(w_pose, (2, 3, 1, 0)).reshape(kin, -1)
    wa = jnp.transpose(w_a, (2, 3, 1, 0)).reshape(kin, -1)
    w = jnp.concatenate([wp, wa], axis=1)                      # (kin, Cout)
    b = jnp.concatenate([b_pose, b_a]).reshape(1, -1)          # (1, Cout)
    return w, b


def _epilogue(y, b_ref, o_ref, bpp):
    """Bias add; sigmoid restricted to the activation columns; lane-dense store.
    bpp = B*P*P (128 here) is vreg-aligned, so the column slices are free."""
    y = y + b_ref[...]
    o_ref[:, :bpp] = y[:, :bpp].astype(o_ref.dtype)
    act = y[:, bpp:]
    o_ref[:, bpp:] = (1.0 / (1.0 + jnp.exp(-act))).astype(o_ref.dtype)


def _caps_kernel_rows(x_ref, w_ref, b_ref, o_ref, *, bpp):
    """Generic path: x block is (tile_rows, Kin) im2col rows."""
    y = jnp.dot(x_ref[...], w_ref[...], preferred_element_type=jnp.float32)
    _epilogue(y, b_ref, o_ref, bpp)


def _caps_kernel_nchw(x_ref, w_ref, b_ref, o_ref, *, bpp):
    """K==1/stride==1 path: x block is (A, tile_hw), read straight from the
    NCHW input; the tiny channel axis is transposed in-kernel so the MXU sees
    (rows, A) @ (A, Cout)."""
    xt = x_ref[...].T                                           # (t_hw, A)
    y = jnp.dot(xt, w_ref[...], preferred_element_type=jnp.float32)
    _epilogue(y, b_ref, o_ref, bpp)


@functools.partial(jax.jit, static_argnames=("tm", "out_dtype"))
def _forward_k1s1(x_nchw, w_pose, b_pose, w_a, b_a, *, tm, out_dtype):
    """K=1, stride=1: no im2col, no layout pass — x is read in NCHW layout."""
    N, A, H, W = x_nchw.shape
    bpp = w_pose.shape[0]
    bact = w_a.shape[0]
    cout = bpp + bact
    hw = H * W

    x3 = x_nchw.reshape(N, A, hw)                               # free reshape
    w_fused, b_fused = _fuse_params(w_pose, b_pose, w_a, b_a)   # (A,Cout),(1,Cout)

    out_itemsize = jnp.dtype(out_dtype).itemsize
    x_row_bytes = _round_up(A, _SUBLANE) * 4                    # A on sublanes
    t_hw, vmem_limit = _plan_row_tile(hw, tm, x_row_bytes, cout, out_itemsize,
                                      row_multiple=_LANE)
    grid = (N, pl.cdiv(hw, t_hw))                               # ragged tail masked

    cost = pl.CostEstimate(
        flops=2 * N * hw * A * cout,
        transcendentals=N * hw * bact,
        bytes_accessed=4 * (N * hw * A + A * cout + cout)
        + out_itemsize * N * hw * cout,
    )

    out = pl.pallas_call(
        functools.partial(_caps_kernel_nchw, bpp=bpp),
        out_shape=jax.ShapeDtypeStruct((N, hw, cout), out_dtype),
        grid=grid,
        in_specs=[
            pl.BlockSpec((None, A, t_hw), lambda n, i: (n, 0, i)),   # NCHW block
            pl.BlockSpec((A, cout), lambda n, i: (0, 0)),            # resident W
            pl.BlockSpec((1, cout), lambda n, i: (0, 0)),            # resident bias
        ],
        out_specs=pl.BlockSpec((None, t_hw, cout), lambda n, i: (n, i, 0)),
        compiler_params=pltpu.CompilerParams(
            dimension_semantics=("parallel", "parallel"),
            vmem_limit_bytes=vmem_limit),
        cost_estimate=cost,
    )(x3, w_fused, b_fused)

    return out.reshape(N, H, W, cout)                           # free reshape


def _extract_patches_nhwc(x_nhwc, K, stride):
    """im2col with feature ordering (ki, kj, cin); NHWC in, (N,Ho,Wo,K*K*A) out."""
    N, H, W, A = x_nhwc.shape
    Ho = (H - K) // stride + 1
    Wo = (W - K) // stride + 1
    cols = []
    for ki in range(K):
        for kj in range(K):
            cols.append(
                x_nhwc[:, ki:ki + stride * Ho:stride, kj:kj + stride * Wo:stride, :])
    return jnp.concatenate(cols, axis=-1), Ho, Wo


@functools.partial(jax.jit, static_argnames=("K", "stride", "tm", "out_dtype"))
def _forward_generic(x_nchw, w_pose, b_pose, w_a, b_a, *, K, stride, tm, out_dtype):
    N, A, H, W = x_nchw.shape
    bpp = w_pose.shape[0]
    bact = w_a.shape[0]
    cout = bpp + bact

    # TODO(synk): for K>1 avoid materializing the K^2 im2col in HBM — halo-load
    # an overlapping spatial tile in-kernel and accumulate K*K small dots.
    x_nhwc = jnp.transpose(x_nchw, (0, 2, 3, 1))
    patches, Ho, Wo = _extract_patches_nhwc(x_nhwc, K, stride)
    kin = K * K * A
    M = N * Ho * Wo
    xm = patches.reshape(M, kin)

    w_fused, b_fused = _fuse_params(w_pose, b_pose, w_a, b_a)

    out_itemsize = jnp.dtype(out_dtype).itemsize
    x_row_bytes = _round_up(kin, _LANE) * 4          # lane-padded (16x when kin=8)
    t_rows, vmem_limit = _plan_row_tile(M, tm, x_row_bytes, cout, out_itemsize,
                                        row_multiple=_SUBLANE)
    grid = (pl.cdiv(M, t_rows),)                     # no pad; ragged tail masked

    cost = pl.CostEstimate(
        flops=2 * M * kin * cout,
        transcendentals=M * bact,
        bytes_accessed=4 * (M * kin + kin * cout + cout) + out_itemsize * M * cout,
    )

    out = pl.pallas_call(
        functools.partial(_caps_kernel_rows, bpp=bpp),
        out_shape=jax.ShapeDtypeStruct((M, cout), out_dtype),
        grid=grid,
        in_specs=[
            pl.BlockSpec((t_rows, kin), lambda i: (i, 0)),       # streamed rows
            pl.BlockSpec((kin, cout), lambda i: (0, 0)),         # resident W
            pl.BlockSpec((1, cout), lambda i: (0, 0)),           # resident bias
        ],
        out_specs=pl.BlockSpec((t_rows, cout), lambda i: (i, 0)),
        compiler_params=pltpu.CompilerParams(
            dimension_semantics=("parallel",),
            vmem_limit_bytes=vmem_limit),
        cost_estimate=cost,
    )(xm, w_fused, b_fused)

    return out.reshape(N, Ho, Wo, cout)              # exact shape, no slice needed


def primary_caps_forward(x_nchw, w_pose, b_pose, w_a, b_a, *, K, stride,
                         tm=4096, out_dtype=None):
    """PrimaryCaps forward.  Returns (N, H', W', B*P*P + B): pose columns first,
    sigmoid activations last, matching torch.cat([p, a], 1).permute(0, 2, 3, 1).

    out_dtype: pass jnp.bfloat16 to halve the dominant output-write HBM traffic
    if downstream tolerates it (epilogue math stays in f32 either way).
    """
    if out_dtype is None:
        out_dtype = x_nchw.dtype
    if K == 1 and stride == 1:
        try:
            return _forward_k1s1(x_nchw, w_pose, b_pose, w_a, b_a,
                                 tm=tm, out_dtype=out_dtype)
        except Exception:
            # Fallback for Mosaic builds that cannot lower the in-kernel
            # (A, t_hw) transpose; costs one extra NCHW->NHWC HBM pass.
            pass
    return _forward_generic(x_nchw, w_pose, b_pose, w_a, b_a,
                            K=K, stride=stride, tm=tm, out_dtype=out_dtype)


def _reference(x_nchw, w_pose, b_pose, w_a, b_a, K, stride):
    """Plain-JAX reference implementing the PyTorch forward exactly."""
    dn = jax.lax.conv_dimension_numbers(x_nchw.shape, w_pose.shape,
                                        ("NCHW", "OIHW", "NCHW"))
    p = jax.lax.conv_general_dilated(x_nchw, w_pose, (stride, stride), "VALID",
                                     dimension_numbers=dn,
                                     precision=jax.lax.Precision.HIGHEST)
    p = p + b_pose.reshape(1, -1, 1, 1)
    a = jax.lax.conv_general_dilated(x_nchw, w_a, (stride, stride), "VALID",
                                     dimension_numbers=dn,
                                     precision=jax.lax.Precision.HIGHEST)
    a = jax.nn.sigmoid(a + b_a.reshape(1, -1, 1, 1))
    out = jnp.concatenate([p, a], axis=1)
    return jnp.transpose(out, (0, 2, 3, 1))


if __name__ == "__main__":
    # PrimaryCaps config: A=8 input channels, B=8 capsule types, P=4 pose size,
    # K=1 kernel, stride=1  ->  output channels BPP + B = 128 + 8 = 136.
    N, A, Hh, Ww = 2, 8, 8, 8
    B, P, K, stride = 8, 4, 1, 1
    BPP = B * P * P

    key = jax.random.PRNGKey(0)
    kx, kwp, kbp, kwa, kba = jax.random.split(key, 5)

    def _bf16_grid(v):
        # Snap test data to the bf16 grid so the correctness check is
        # insensitive to MXU f32 pass-count differences between the Pallas
        # kernel and the XLA reference convolution.
        return v.astype(jnp.bfloat16).astype(jnp.float32)

    x = _bf16_grid(jax.random.normal(kx, (N, A, Hh, Ww), dtype=jnp.float32))

    # Deterministic synthetic parameters (Conv2d shapes: (out, in, K, K) + bias).
    fan_in = A * K * K
    bound = 1.0 / (fan_in ** 0.5)
    w_pose = _bf16_grid(jax.random.uniform(kwp, (BPP, A, K, K), jnp.float32, -bound, bound))
    b_pose = _bf16_grid(jax.random.uniform(kbp, (BPP,), jnp.float32, -bound, bound))
    w_a = _bf16_grid(jax.random.uniform(kwa, (B, A, K, K), jnp.float32, -bound, bound))
    b_a = _bf16_grid(jax.random.uniform(kba, (B,), jnp.float32, -bound, bound))

    out = primary_caps_forward(x, w_pose, b_pose, w_a, b_a, K=K, stride=stride)
    out = jax.block_until_ready(out)

    expected_shape = (N, (Hh - K) // stride + 1, (Ww - K) // stride + 1, BPP + B)
    assert out.shape == expected_shape, (out.shape, expected_shape)

    ref = jax.block_until_ready(_reference(x, w_pose, b_pose, w_a, b_a, K, stride))
    assert jnp.allclose(out, ref, atol=1e-5, rtol=1e-5), \
        float(jnp.max(jnp.abs(out - ref)))

    print("KERNEL_OK")
</pallas_src>

<mosaic_0001>
module attributes {stable_mosaic.version = 11 : i64} {
  func.func @_caps_kernel_nchw(%arg0: i32, %arg1: i32, %arg2: memref<1x8x64xf32, #tpu.memory_space<vmem>>, %arg3: memref<8x136xf32, #tpu.memory_space<vmem>>, %arg4: memref<1x136xf32, #tpu.memory_space<vmem>>, %arg5: memref<1x64x136xf32, #tpu.memory_space<vmem>>) attributes {dimension_semantics = [#tpu.dimension_semantics<parallel>, #tpu.dimension_semantics<parallel>], iteration_bounds = array<i64: 2, 1>, scalar_prefetch = 0 : i64, scratch_operands = 0 : i64, tpu.core_type = #tpu.core_type<tc>, window_params = [{transform_indices = @transform_0, window_bounds = array<i64: 1, 8, 64>}, {pipeline_mode = #tpu.pipeline_mode<synchronous>, transform_indices = @transform_1, window_bounds = array<i64: 8, 136>}, {pipeline_mode = #tpu.pipeline_mode<synchronous>, transform_indices = @transform_2, window_bounds = array<i64: 1, 136>}, {transform_indices = @transform_3, window_bounds = array<i64: 1, 64, 136>}]} {
    %c0 = arith.constant 0 : index
    %c0_0 = arith.constant 0 : index
    %c0_1 = arith.constant 0 : index
    %0 = vector.load %arg2[%c0, %c0_0, %c0_1] : memref<1x8x64xf32, #tpu.memory_space<vmem>>, vector<1x8x64xf32>
    %1 = vector.shape_cast %0 : vector<1x8x64xf32> to vector<8x64xf32>
    %2 = tpu.transpose %1, [1, 0] : vector<8x64xf32> -> vector<64x8xf32>
    %c0_2 = arith.constant 0 : index
    %c0_3 = arith.constant 0 : index
    %3 = vector.load %arg3[%c0_2, %c0_3] : memref<8x136xf32, #tpu.memory_space<vmem>>, vector<8x136xf32>
    %cst = arith.constant dense<0.000000e+00> : vector<64x136xf32>
    %4 = tpu.matmul %2, %3, %cst {dimension_numbers = #tpu.dot_dimension_numbers<[1], [0], [0], [1], [0, 0, 1, 1], [], []>} : vector<64x8xf32>, vector<8x136xf32>, vector<64x136xf32> -> vector<64x136xf32>
    %c0_4 = arith.constant 0 : index
    %c0_5 = arith.constant 0 : index
    %5 = vector.load %arg4[%c0_4, %c0_5] : memref<1x136xf32, #tpu.memory_space<vmem>>, vector<1x136xf32>
    %6 = vector.broadcast %5 : vector<1x136xf32> to vector<64x136xf32>
    %7 = arith.addf %4, %6 : vector<64x136xf32>
    %8 = vector.extract_strided_slice %7 {offsets = [0, 0], sizes = [64, 128], strides = [1, 1]} : vector<64x136xf32> to vector<64x128xf32>
    %c0_6 = arith.constant 0 : index
    %c0_7 = arith.constant 0 : index
    %c0_8 = arith.constant 0 : index
    %9 = vector.load %arg5[%c0_6, %c0_7, %c0_8] : memref<1x64x136xf32, #tpu.memory_space<vmem>>, vector<1x64x128xf32>
    %10 = vector.shape_cast %9 : vector<1x64x128xf32> to vector<64x128xf32>
    %11 = vector.shape_cast %8 : vector<64x128xf32> to vector<1x64x128xf32>
    tpu.vector_store %arg5[%c0_6, %c0_7, %c0_8], %11 {strides = array<i32>} : memref<1x64x136xf32, #tpu.memory_space<vmem>>, vector<1x64x128xf32>,
    %12 = vector.extract_strided_slice %7 {offsets = [0, 128], sizes = [64, 8], strides = [1, 1]} : vector<64x136xf32> to vector<64x8xf32>
    %cst_9 = arith.constant 0.000000e+00 : f32
    %13 = vector.broadcast %cst_9 : f32 to vector<64x8xf32>
    %14 = arith.subf %13, %12 : vector<64x8xf32>
    %15 = math.exp %14 : vector<64x8xf32>
    %cst_10 = arith.constant 1.000000e+00 : f32
    %16 = vector.broadcast %cst_10 : f32 to vector<64x8xf32>
    %17 = arith.addf %16, %15 : vector<64x8xf32>
    %cst_11 = arith.constant 1.000000e+00 : f32
    %18 = vector.broadcast %cst_11 : f32 to vector<64x8xf32>
    %19 = arith.divf %18, %17 : vector<64x8xf32>
    %c0_12 = arith.constant 0 : index
    %c0_13 = arith.constant 0 : index
    %c128 = arith.constant 128 : index
    %20 = vector.load %arg5[%c0_12, %c0_13, %c128] : memref<1x64x136xf32, #tpu.memory_space<vmem>>, vector<1x64x8xf32>
    %21 = vector.shape_cast %20 : vector<1x64x8xf32> to vector<64x8xf32>
    %22 = vector.shape_cast %19 : vector<64x8xf32> to vector<1x64x8xf32>
    tpu.vector_store %arg5[%c0_12, %c0_13, %c128], %22 {strides = array<i32>} : memref<1x64x136xf32, #tpu.memory_space<vmem>>, vector<1x64x8xf32>,
    return
  }
  func.func @transform_0(%arg0: i32, %arg1: i32) -> (i32, i32, i32) {
    %c0_i32 = arith.constant 0 : i32
    %c0_i32_0 = arith.constant 0 : i32
    return %arg0, %c0_i32, %arg1 : i32, i32, i32
  }
  func.func @transform_1(%arg0: i32, %arg1: i32) -> (i32, i32) {
    %c0_i32 = arith.constant 0 : i32
    %c0_i32_0 = arith.constant 0 : i32
    %c0_i32_1 = arith.constant 0 : i32
    return %c0_i32, %c0_i32_0 : i32, i32
  }
  func.func @transform_2(%arg0: i32, %arg1: i32) -> (i32, i32) {
    %c0_i32 = arith.constant 0 : i32
    %c0_i32_0 = arith.constant 0 : i32
    %c0_i32_1 = arith.constant 0 : i32
    return %c0_i32, %c0_i32_0 : i32, i32
  }
  func.func @transform_3(%arg0: i32, %arg1: i32) -> (i32, i32, i32) {
    %c0_i32 = arith.constant 0 : i32
    %c0_i32_0 = arith.constant 0 : i32
    return %arg0, %arg1, %c0_i32 : i32, i32, i32
  }
}

module attributes {stable_mosaic.version = 11 : i64} {
  func.func @_caps_kernel_rows(%arg0: i32, %arg1: memref<128x8xf32, #tpu.memory_space<vmem>>, %arg2: memref<8x136xf32, #tpu.memory_space<vmem>>, %arg3: memref<1x136xf32, #tpu.memory_space<vmem>>, %arg4: memref<128x136xf32, #tpu.memory_space<vmem>>) attributes {dimension_semantics = [#tpu.dimension_semantics<parallel>], iteration_bounds = array<i64: 1>, scalar_prefetch = 0 : i64, scratch_operands = 0 : i64, tpu.core_type = #tpu.core_type<tc>, window_params = [{transform_indices = @transform_0, window_bounds = array<i64: 128, 8>}, {pipeline_mode = #tpu.pipeline_mode<synchronous>, transform_indices = @transform_1, window_bounds = array<i64: 8, 136>}, {pipeline_mode = #tpu.pipeline_mode<synchronous>, transform_indices = @transform_2, window_bounds = array<i64: 1, 136>}, {transform_indices = @transform_3, window_bounds = array<i64: 128, 136>}]} {
    %c0 = arith.constant 0 : index
    %c0_0 = arith.constant 0 : index
    %0 = vector.load %arg1[%c0, %c0_0] : memref<128x8xf32, #tpu.memory_space<vmem>>, vector<128x8xf32>
    %c0_1 = arith.constant 0 : index
    %c0_2 = arith.constant 0 : index
    %1 = vector.load %arg2[%c0_1, %c0_2] : memref<8x136xf32, #tpu.memory_space<vmem>>, vector<8x136xf32>
    %cst = arith.constant dense<0.000000e+00> : vector<128x136xf32>
    %2 = tpu.matmul %0, %1, %cst {dimension_numbers = #tpu.dot_dimension_numbers<[1], [0], [0], [1], [0, 0, 1, 1], [], []>} : vector<128x8xf32>, vector<8x136xf32>, vector<128x136xf32> -> vector<128x136xf32>
    %c0_3 = arith.constant 0 : index
    %c0_4 = arith.constant 0 : index
    %3 = vector.load %arg3[%c0_3, %c0_4] : memref<1x136xf32, #tpu.memory_space<vmem>>, vector<1x136xf32>
    %4 = vector.broadcast %3 : vector<1x136xf32> to vector<128x136xf32>
    %5 = arith.addf %2, %4 : vector<128x136xf32>
    %6 = vector.extract_strided_slice %5 {offsets = [0, 0], sizes = [128, 128], strides = [1, 1]} : vector<128x136xf32> to vector<128x128xf32>
    %c0_5 = arith.constant 0 : index
    %c0_6 = arith.constant 0 : index
    %7 = vector.load %arg4[%c0_5, %c0_6] : memref<128x136xf32, #tpu.memory_space<vmem>>, vector<128x128xf32>
    tpu.vector_store %arg4[%c0_5, %c0_6], %6 {strides = array<i32>} : memref<128x136xf32, #tpu.memory_space<vmem>>, vector<128x128xf32>,
    %8 = vector.extract_strided_slice %5 {offsets = [0, 128], sizes = [128, 8], strides = [1, 1]} : vector<128x136xf32> to vector<128x8xf32>
    %cst_7 = arith.constant 0.000000e+00 : f32
    %9 = vector.broadcast %cst_7 : f32 to vector<128x8xf32>
    %10 = arith.subf %9, %8 : vector<128x8xf32>
    %11 = math.exp %10 : vector<128x8xf32>
    %cst_8 = arith.constant 1.000000e+00 : f32
    %12 = vector.broadcast %cst_8 : f32 to vector<128x8xf32>
    %13 = arith.addf %12, %11 : vector<128x8xf32>
    %cst_9 = arith.constant 1.000000e+00 : f32
    %14 = vector.broadcast %cst_9 : f32 to vector<128x8xf32>
    %15 = arith.divf %14, %13 : vector<128x8xf32>
    %c0_10 = arith.constant 0 : index
    %c128 = arith.constant 128 : index
    %16 = vector.load %arg4[%c0_10, %c128] : memref<128x136xf32, #tpu.memory_space<vmem>>, vector<128x8xf32>
    tpu.vector_store %arg4[%c0_10, %c128], %15 {strides = array<i32>} : memref<128x136xf32, #tpu.memory_space<vmem>>, vector<128x8xf32>,
    return
  }
  func.func @transform_0(%arg0: i32) -> (i32, i32) {
    %c0_i32 = arith.constant 0 : i32
    %c0_i32_0 = arith.constant 0 : i32
    return %arg0, %c0_i32 : i32, i32
  }
  func.func @transform_1(%arg0: i32) -> (i32, i32) {
    %c0_i32 = arith.constant 0 : i32
    %c0_i32_0 = arith.constant 0 : i32
    %c0_i32_1 = arith.constant 0 : i32
    return %c0_i32, %c0_i32_0 : i32, i32
  }
  func.func @transform_2(%arg0: i32) -> (i32, i32) {
    %c0_i32 = arith.constant 0 : i32
    %c0_i32_0 = arith.constant 0 : i32
    %c0_i32_1 = arith.constant 0 : i32
    return %c0_i32, %c0_i32_0 : i32, i32
  }
  func.func @transform_3(%arg0: i32) -> (i32, i32) {
    %c0_i32 = arith.constant 0 : i32
    %c0_i32_0 = arith.constant 0 : i32
    return %arg0, %c0_i32 : i32, i32
  }
}

</mosaic_0001>

<bundles_post_ra>
// kernel: _forward_k1s1.1
= control target key start
LH: loop header
LB: loop body
LE: loop exit
PB: predicated region body
PF: predicated region fallthrough
CT: control target
= control target key end

     0   :  { %8 = vsyncpa [#allocation3], 0  ;;  %s934_s0 = inlined_call_operand.vmem [shape: f32[2,8,64], index: 0, kind: input, shape index: {}]   ;;  %s935_s1 = inlined_call_operand.vmem [shape: f32[8,136], index: 1, kind: input, shape index: {}]   ;;  %s936_s2 = inlined_call_operand.vmem [shape: f32[1,136], index: 2, kind: input, shape index: {}]   ;;  %s937_s3 = inlined_call_operand.hbm [shape: f32[2,64,136], index: 3, kind: output, shape index: {}]  }
   0x1   :  { %10 = vsyncpa [#allocation3 + $0x1], 0  ;;  %s751_s12 = smov 0   ;;  %s753_s13 = smov 0  }
   0x2   :  { %s755_s14 = smov 0   ;;  %s757_s15 = smov 0  }
   0x3   :  { %s759_s16 = smov 0   ;;  %s761_s17 = smov 0  }
   0x4 LB: > { %s534_s18 = sadd.s32 4294967295, %s725_s17   ;;  %s535_s19 = sadd.s32 4294967294, %s725_s17   ;;  %s725_s17 = sphi %s761_s17, %s16_s17   ;;  %s721_s16 = sphi %s759_s16, %s944_s16   ;;  %s717_s15 = sphi %s757_s15, %s943_s15   ;;  %s713_s14 = sphi %s755_s14, %s942_s14   ;;  %s709_s13 = sphi %s753_s13, %s941_s13   ;;  %s705_s12 = sphi %s751_s12, %s940_s12  }
   0x5   : > { %s28_s20 = sadd.s32 1, %s721_s16  ;;  %s107_s21 = sadd.s32 1, %s713_s14 }
   0x6   : > { %p30_p0 = scmp.ge.s32.totalorder %s28_s20, 2  ;;  %p117_p1 = scmp.ne.s32.totalorder %s713_s14, %s709_s13 }
   0x7   : > { %p118_p2 = scmp.eq.s32.totalorder %s534_s18, 1  ;;  %p123_p3 = scmp.ne.s32.totalorder %s709_s13, %s705_s12 }
   0x8   : > { %s946_s20 = smov (%p30_p0, %s28_s20), 0  ;;  %p124_p5 = scmp.eq.s32.totalorder %s535_s19, 1 }
   0x9   : > { %p791_p4 = por %p118_p2, %p117_p1  ;;  %s102_s23 = ssub.s32 %s721_s16, %s946_s20 }
   0xa   : > { %p538_p6 = scmp.ge.s32.totalorder %s725_s17, 1  ;;  %p105_p7 = scmp.eq.s32.totalorder %s102_s23, 0 }
   0xb   : > { %p798_p8 = por %p124_p5, %p123_p3  ;;  %p158_p9 = scmp.lt.s32.totalorder %s725_s17, 3 }
   0xc   : > { %s804_s25 = scalar_select %p105_p7, %s713_s14, %s107_s21  }
   0xd   : > { %p159_p10 = pnand %p538_p6, %p158_p9 }
   0xe   : > { %p184_p11 = scmp.lt.s32.totalorder (!%p159_p10), %s717_s15, 1  ;;  %v226_v0 = vld [vmem:[%s935_s1 + $0x8] sm:$0xff] (!%p159_p10)  ;;  %v225_v1 = vld [vmem:[%s935_s1] sm:$0xff] (!%p159_p10)  ;;  %v727_v2 = vmov (!%p159_p10), 0.0   ;;  %vm239_vm0 = vcmask (!%p159_p10), 64512   ;;  %v229_v12 = vlaneseq (!%p159_p10)  ;;  %s181_s8 = sand.u32 (!%p159_p10), 1, %s709_s13  }
   0xf   : > { %162 = sbr.rel (%p159_p10) target bundleno = 442 (0x1ba), region = 32  ;;  %264 = vmatprep.subr.mxu0 (!%p159_p10), %v226_v0  ;;  %328 = vmatprep.mubr.f32.mxu0 (!%p159_p10), %v727_v2  ;;  %v227_v15 = vld [vmem:[%s936_s2] sm:$0x3] (!%p159_p10)  ;;  %s539_s11 = sshll.u32 (!%p159_p10), %s181_s8, 7 }
  0x10   : > { %265 = vmatpush1.msra.mxu0 (!%p159_p10), %v225_v1  ;;  %555 = vmatprep.subr.mxu1 (!%p159_p10), %v226_v0  ;;  %v230_v13 = vshrl.u32 (!%p159_p10), %v229_v12, 7  ;;  %s837_s18 = scalar_lea.vmem (!%p159_p10), [#allocation2], %s539_s11  ;;  %s554_s19 = sshll.u32 (!%p159_p10), %s717_s15, 11 }
  0x11   : > { %556 = vmatpush1.msra.mxu1 (!%p159_p10), %v225_v1  ;;  %352 = vmatprep.mubr.f32.mxu1 (!%p159_p10), %v727_v2  ;;  %s458_s21 = sshll.u32 (!%p159_p10), %s837_s18, 4  ;;  %s880_s27 = scalar_lea.hbm (!%p159_p10), %s937_s3, %s554_s19  ;;  %s882_s21 = int_to_ptr.vmem [resolvable:$true] %s458_s21 }
  0x12   : > { %v231_v14 = vsub.s32 (!%p159_p10), 0, %v230_v13  ;;  %v235_v16 = vsub.s32 (!%p159_p10), 1, %v230_v13  ;;  %s888_s28 = scalar_lea.sflag (!%p159_p10), [#allocation3], %s181_s8  ;;  %s728_s29 = smov (!%p159_p10), [#allocation2]  }
  0x14   : > { %v831_v17 = vrot.slane (!%p159_p10), %v227_v15, %v231_v14  ;;  %v833_v18 = vrot.slane (!%p159_p10), %v227_v15, %v235_v16 }
  0x16   : > { %s185_s30 = scalar_select %p184_p11, %s717_s15, 1 }
  0x17   : > { %s647_s15 = scalar_lea.vmem %s882_s21, 2048 }
  0x18   : > { %s540_s4 = sshll.u32 %s185_s30, 3  ;;  %p648_p12 = scmp.ne.s32.totalorder %s882_s21, %s647_s15 }
  0x19   : > { %s190_s7 = scalar_lea.vmem %s934_s0, %s540_s4  ;;  %s651_s30 = sshll.u32 %s728_s29, 4  ;;  %s652_s30 = int_to_ptr.vmem [resolvable:$false] %s651_s30 }
  0x1a   : > { %v192_v3 = vld [vmem:[%s190_s7] sm:$0xff]  ;;  %p649_p13 = pnand %p648_p12, %p791_p4  ;;  %s653_s4 = scalar_lea.vmem %s652_s30, 4096 }
  0x1b   : > { %193 = vxpose.xlu0.b32.start.end [1/1] (short) (narrow) %v192_v3, 64  ;;  %p654_p1 = scmp.lt.s32.totalorder %s882_s21, %s652_s30  ;;  %p655_p2 = scmp.lt.s32.totalorder %s653_s4, %s647_s15 }
  0x1c   : > { %p650_p0 = pneg %p649_p13 }
  0x1d   : > { %p656_p3 = por %p655_p2, %p654_p1 }
  0x1f   : > { %p657_p5 = pnand %p656_p3, %p650_p0 }
  0x9b   : > { %v209_v4 = vpop.trf.xlu0 }
  0x9c   : > { %541 = vmatmul.mubr.msk.f32.vlgmr.msra.gmra.mrb[0].mxu0 %vm239_vm0, %v209_v4 }
  0x9d   : > { %334 = vmatprep.mubr.f32.mxu0 %v727_v2 }
  0x9f   : > { %v210_v5 = vpop.trf.xlu0 }
  0xa0   : > { %542 = vmatmul.mubr.msk.f32.gmra.mrb[2].mxu0 %vm239_vm0, %v210_v5 }
  0xa1   : > { %340 = vmatprep.mubr.f32.mxu0 %v727_v2 }
  0xa3   : > { %v211_v6 = vpop.trf.xlu0 }
  0xa4   : > { %543 = vmatmul.mubr.msk.f32.gmra.mrb[4].mxu0 %vm239_vm0, %v211_v6 }
  0xa5   : > { %346 = vmatprep.mubr.f32.mxu0 %v727_v2 }
  0xa7   : > { %v212_v7 = vpop.trf.xlu0 }
  0xa8   : > { %544 = vmatmul.mubr.msk.f32.gmra.mrb[6].mxu0 %vm239_vm0, %v212_v7 }
  0xab   : > { %v213_v8 = vpop.trf.xlu0 }
  0xac   : > { %545 = vmatmul.mubr.msk.f32.vlgmr.msra.gmra.mrb[0].mxu1 %vm239_vm0, %v213_v8 }
  0xad   : > { %358 = vmatprep.mubr.f32.mxu1 %v727_v2 }
  0xaf   : > { %v214_v9 = vpop.trf.xlu0 }
  0xb0   : > { %546 = vmatmul.mubr.msk.f32.gmra.mrb[2].mxu1 %vm239_vm0, %v214_v9 }
  0xb1   : > { %364 = vmatprep.mubr.f32.mxu1 %v727_v2 }
  0xb3   : > { %v215_v10 = vpop.trf.xlu0 }
  0xb4   : > { %547 = vmatmul.mubr.msk.f32.gmra.mrb[4].mxu1 %vm239_vm0, %v215_v10 }
  0xb5   : > { %370 = vmatprep.mubr.f32.mxu1 %v727_v2 }
  0xb7   : > { %v216_v11 = vpop.trf.xlu0 }
  0xb8   : > { %548 = vmatmul.mubr.msk.f32.gmra.mrb[6].mxu1 %vm239_vm0, %v216_v11 }
 0x16f   : > { %v330_v19 = vpop.f32.mrb[0].mxu0 }
 0x170   : > { %v331_v20 = vadd.f32 %v330_v19, %v831_v17  ;;  %v332_v21 = vpop.f32.mrb[1].mxu0 }
 0x171   : > { %v333_v22 = vadd.f32 %v332_v21, %v833_v18 }
 0x172   : > { %377 = vst [vmem:[%s837_s18] sm:$0xff] %v331_v20 }
 0x173   : > { %v385_v23 = vsub.f32 0.0, %v333_v22  ;;  %v336_v24 = vpop.f32.mrb[2].mxu0 }
 0x174   : > { %v337_v25 = vadd.f32 %v336_v24, %v831_v17  ;;  %v338_v26 = vpop.f32.mrb[3].mxu0 }
 0x175   : > { %v393_v27 = vmul.f32 1.442695, %v385_v23  ;;  %v339_v28 = vadd.f32 %v338_v26, %v833_v18 }
 0x176   : > { %378 = vst [vmem:[%s837_s18 + $0x10] sm:$0xff] %v337_v25 }
 0x177   : > { %615 = vpow2.f32 %v393_v27  ;;  %v386_v29 = vsub.f32 0.0, %v339_v28  ;;  %v342_v30 = vpop.f32.mrb[4].mxu0 }
 0x178   : > { %v343_v31 = vadd.f32 %v342_v30, %v831_v17  ;;  %v344_v32 = vpop.f32.mrb[5].mxu0 }
 0x179   : > { %v395_v33 = vmul.f32 1.442695, %v386_v29  ;;  %v345_v34 = vadd.f32 %v344_v32, %v833_v18 }
 0x17a   : > { %379 = vst [vmem:[%s837_s18 + $0x20] sm:$0xff] %v343_v31 }
 0x17b   : > { %617 = vpow2.f32 %v395_v33  ;;  %v387_v35 = vsub.f32 0.0, %v345_v34  ;;  %v348_v36 = vpop.f32.mrb[6].mxu0 }
 0x17c   : > { %v349_v37 = vadd.f32 %v348_v36, %v831_v17  ;;  %v350_v38 = vpop.f32.mrb[7].mxu0 }
 0x17d   : > { %v397_v39 = vmul.f32 1.442695, %v387_v35  ;;  %v351_v40 = vadd.f32 %v350_v38, %v833_v18 }
 0x17e   : > { %380 = vst [vmem:[%s837_s18 + $0x30] sm:$0xff] %v349_v37 }
 0x17f   : > { %619 = vpow2.f32 %v397_v39  ;;  %v388_v41 = vsub.f32 0.0, %v351_v40  ;;  %v354_v42 = vpop.f32.mrb[0].mxu1 }
 0x180   : > { %v355_v43 = vadd.f32 %v354_v42, %v831_v17  ;;  %v356_v44 = vpop.f32.mrb[1].mxu1 }
 0x181   : > { %v616_v45 = vpop.eup %615  ;;  %v399_v46 = vmul.f32 1.442695, %v388_v41  ;;  %v357_v47 = vadd.f32 %v356_v44, %v833_v18 }
 0x182   : > { %v409_v48 = vadd.f32 1.0, %v616_v45  ;;  %381 = vst [vmem:[%s837_s18 + $0x40] sm:$0xff] %v355_v43 }
 0x183   : > { %621 = vpow2.f32 %v399_v46  ;;  %v389_v49 = vsub.f32 0.0, %v357_v47  ;;  %v360_v50 = vpop.f32.mrb[2].mxu1 }
 0x184   : > { %623 = vrcp.f32 %v409_v48  ;;  %v361_v51 = vadd.f32 %v360_v50, %v831_v17  ;;  %v362_v52 = vpop.f32.mrb[3].mxu1 }
 0x185   : > { %v618_v53 = vpop.eup %617  ;;  %v401_v54 = vmul.f32 1.442695, %v389_v49  ;;  %v363_v55 = vadd.f32 %v362_v52, %v833_v18 }
 0x186   : > { %v410_v56 = vadd.f32 1.0, %v618_v53  ;;  %382 = vst [vmem:[%s837_s18 + $0x50] sm:$0xff] %v361_v51 }
 0x187   : > { %625 = vpow2.f32 %v401_v54  ;;  %v390_v57 = vsub.f32 0.0, %v363_v55  ;;  %v366_v58 = vpop.f32.mrb[4].mxu1 }
 0x188   : > { %627 = vrcp.f32 %v410_v56  ;;  %v367_v59 = vadd.f32 %v366_v58, %v831_v17  ;;  %v368_v60 = vpop.f32.mrb[5].mxu1 }
 0x189   : > { %v620_v61 = vpop.eup %619  ;;  %v403_v62 = vmul.f32 1.442695, %v390_v57  ;;  %v369_v63 = vadd.f32 %v368_v60, %v833_v18 }
 0x18a   : > { %v411_v0 = vadd.f32 1.0, %v620_v61  ;;  %383 = vst [vmem:[%s837_s18 + $0x60] sm:$0xff] %v367_v59 }
 0x18b   : > { %629 = vpow2.f32 %v403_v62  ;;  %v391_v1 = vsub.f32 0.0, %v369_v63  ;;  %v372_v2 = vpop.f32.mrb[6].mxu1 }
 0x18c   : > { %631 = vrcp.f32 %v411_v0  ;;  %v373_v3 = vadd.f32 %v372_v2, %v831_v17  ;;  %v374_v4 = vpop.f32.mrb[7].mxu1 }
 0x18d   : > { %v622_v5 = vpop.eup %621  ;;  %v405_v6 = vmul.f32 1.442695, %v391_v1  ;;  %v375_v7 = vadd.f32 %v374_v4, %v833_v18 }
 0x18e   : > { %v624_v8 = vpop.eup %623  ;;  %v412_v9 = vadd.f32 1.0, %v622_v5  ;;  %384 = vst [vmem:[%s837_s18 + $0x70] sm:$0xff] %v373_v3 }
 0x18f   : > { %433 = vst.msk [vmem:[%s837_s18 + $0x8] sm:$0xff] %vm239_vm0, %v624_v8  ;;  %633 = vpow2.f32 %v405_v6  ;;  %v392_v10 = vsub.f32 0.0, %v375_v7 }
 0x190   : > { %635 = vrcp.f32 %v412_v9 }
 0x191   : > { %v626_v11 = vpop.eup %625  ;;  %v407_v12 = vmul.f32 1.442695, %v392_v10 }
 0x192   : > { %v628_v13 = vpop.eup %627  ;;  %v413_v14 = vadd.f32 1.0, %v626_v11 }
 0x193   : > { %434 = vst.msk [vmem:[%s837_s18 + $0x18] sm:$0xff] %vm239_vm0, %v628_v13  ;;  %637 = vpow2.f32 %v407_v12 }
 0x194   : > { %639 = vrcp.f32 %v413_v14 }
 0x195   : > { %v630_v15 = vpop.eup %629 }
 0x196   : > { %v632_v16 = vpop.eup %631  ;;  %v414_v17 = vadd.f32 1.0, %v630_v15 }
 0x197   : > { %435 = vst.msk [vmem:[%s837_s18 + $0x28] sm:$0xff] %vm239_vm0, %v632_v16 }
 0x198   : > { %641 = vrcp.f32 %v414_v17 }
 0x199   : > { %v634_v18 = vpop.eup %633 }
 0x19a   : > { %v636_v19 = vpop.eup %635  ;;  %v415_v20 = vadd.f32 1.0, %v634_v18 }
 0x19b   : > { %436 = vst.msk [vmem:[%s837_s18 + $0x38] sm:$0xff] %vm239_vm0, %v636_v19 }
 0x19c   : > { %643 = vrcp.f32 %v415_v20 }
 0x19d   : > { %v638_v21 = vpop.eup %637 }
 0x19e   : > { %v640_v22 = vpop.eup %639  ;;  %v416_v23 = vadd.f32 1.0, %v638_v21 }
 0x19f   : > { %437 = vst.msk [vmem:[%s837_s18 + $0x48] sm:$0xff] %vm239_vm0, %v640_v22 }
 0x1a0   : > { %645 = vrcp.f32 %v416_v23 }
 0x1a2   : > { %v642_v24 = vpop.eup %641 }
 0x1a3   : > { %438 = vst.msk [vmem:[%s837_s18 + $0x58] sm:$0xff] %vm239_vm0, %v642_v24 }
 0x1a6   : > { %v644_v25 = vpop.eup %643 }
 0x1a7   : > { %439 = vst.msk [vmem:[%s837_s18 + $0x68] sm:$0xff] %vm239_vm0, %v644_v25 }
 0x1aa   : > { %v646_v26 = vpop.eup %645 }
 0x1ab   : > { %440 = vst.msk [vmem:[%s837_s18 + $0x78] sm:$0xff] %vm239_vm0, %v646_v26 }
 0x1ac   : > { %660 = shalt.err (!%p657_p5)
}
 0x1ad   : > { %s661_s5 = scalar_lea.hbm %s880_s27, 2048  ;;  %s665_s8 = scalar_lea.hbm %s937_s3, 4096 }
 0x1ae   : > { %p662_p6 = scmp.ne.s32.totalorder %s880_s27, %s661_s5  ;;  %p666_p10 = scmp.lt.u32.totalorder %s880_s27, %s937_s3 }
 0x1af   : > { %p667_p11 = scmp.lt.u32.totalorder %s665_s8, %s661_s5  ;;  %p669_p13 = scmp.lt.u32.totalorder %s661_s5, %s880_s27 }
 0x1b0   : > { %p663_p7 = pnand %p662_p6, %p791_p4 }
 0x1b1   : > { %p668_p12 = por %p667_p11, %p666_p10 }
 0x1b2   : > { %p664_p9 = pneg %p663_p7 }
 0x1b3   : > { %p670_p0 = por %p669_p13, %p668_p12 }
 0x1b5   : > { %p671_p1 = pnand %p670_p0, %p664_p9 }
 0x1b7   : > { %674 = shalt.err (!%p671_p1)
}
 0x1b8   : > { %s729_s11 = smov 256   ;;  %s730_s18 = smov 16  }
 0x1b9   : > { %557 = dma.vmem_to_hbm [thread:$0]  (%p791_p4), %s882_s21, 2048, %s880_s27, %s888_s28, %s729_s11, %s729_s11, %s730_s18  }
 0x1ba PF: > { %p563_p2 = scmp.ge.s32.totalorder %s725_s17, 2  ;;  %s473_s19 = sand.u32 1, %s705_s12  }
 0x1bb   : > { %s474_s23 = scalar_lea.sflag [#allocation3], %s473_s19 }
 0x1bc   : > { %p560_p3 = pnand %p563_p2, %p798_p8 }
 0x1be   : > { %700 = dma.done.wait (!%p560_p3), %s474_s23, 2048  }
 0x1bf   : > { %702 = vsyncadd (!%p560_p3), %s474_s23, 4294965248  ;;  %s16_s17 = sadd.s32 1, %s725_s17   ;;  %s940_s12 = smov %s709_s13 }
 0x1c0   : > { %p13_p5 = scmp.ge.s32.totalorder %s16_s17, 4   ;;  %s941_s13 = smov %s713_s14 }
 0x1c1   : > { %s942_s14 = smov %s804_s25  ;;  %s943_s15 = smov %s721_s16 }
 0x1c2   : > { %s944_s16 = smov %s946_s20  ;;  %15 = sbr.rel (!%p13_p5) target bundleno = 4 (0x4), region = 67 }
 0x1c9   :  { %479 = vsyncpa [#allocation3], 1 }
 0x1ca   :  { %481 = vsyncpa [#allocation3 + $0x1], 1 }

// kernel: _forward_generic.1
= control target key start
LH: loop header
LB: loop body
LE: loop exit
PB: predicated region body
PF: predicated region fallthrough
CT: control target
= control target key end

     0   :  { %vm45_vm0 = vcmask 64512   ;;  %v509_v4 = vmov 0.0   ;;  %s670_s0 = inlined_call_operand.vmem [shape: f32[128,8], index: 0, kind: input, shape index: {}]   ;;  %s671_s1 = inlined_call_operand.vmem [shape: f32[8,136], index: 1, kind: input, shape index: {}]   ;;  %s672_s2 = inlined_call_operand.vmem [shape: f32[1,136], index: 2, kind: input, shape index: {}]   ;;  %s673_s3 = inlined_call_operand.hbm [shape: f32[128,136], index: 3, kind: output, shape index: {}]  }
   0x1   :  { %v32_v0 = vld [vmem:[%s671_s1 + $0x8] sm:$0xff]  ;;  %v31_v1 = vld [vmem:[%s671_s1] sm:$0xff]  ;;  %158 = vmatprep.mubr.f32.mxu0 %v509_v4  ;;  %206 = vmatprep.mubr.f32.mxu1 %v509_v4 }
   0x2   :  { %94 = vmatprep.subr.mxu0 %v32_v0  ;;  %415 = vmatprep.subr.mxu1 %v32_v0  ;;  %v15_v2 = vld [vmem:[%s670_s0] sm:$0xff]  ;;  %v16_v5 = vld [vmem:[%s670_s0 + $0x8] sm:$0xff] }
   0x3   :  { %v23_v3 = vld [vmem:[%s670_s0 + $0x40] sm:$0xff]  ;;  %95 = vmatpush1.msra.mxu0 %v31_v1  ;;  %416 = vmatpush1.msra.mxu1 %v31_v1  ;;  %v24_v6 = vld [vmem:[%s670_s0 + $0x48] sm:$0xff] }
   0x4   :  { %399 = vmatmul.mubr.msk.f32.vlgmr.msra.gmra.mrb[0].mxu0 %vm45_vm0, %v15_v2  ;;  %407 = vmatmul.mubr.msk.f32.vlgmr.msra.gmra.mrb[0].mxu1 %vm45_vm0, %v23_v3 }
   0x5   :  { %164 = vmatprep.mubr.f32.mxu0 %v509_v4  ;;  %212 = vmatprep.mubr.f32.mxu1 %v509_v4 }
   0x6   :  { %8 = vsyncpa [#allocation3], 0  ;;  %v17_v7 = vld [vmem:[%s670_s0 + $0x10] sm:$0xff]  ;;  %v18_v9 = vld [vmem:[%s670_s0 + $0x18] sm:$0xff]  ;;  %v35_v19 = vlaneseq }
   0x7   :  { %v25_v8 = vld [vmem:[%s670_s0 + $0x50] sm:$0xff]  ;;  %v26_v10 = vld [vmem:[%s670_s0 + $0x58] sm:$0xff]  ;;  %v19_v11 = vld [vmem:[%s670_s0 + $0x20] sm:$0xff] }
   0x8   :  { %400 = vmatmul.mubr.msk.f32.gmra.mrb[2].mxu0 %vm45_vm0, %v16_v5  ;;  %408 = vmatmul.mubr.msk.f32.gmra.mrb[2].mxu1 %vm45_vm0, %v24_v6  ;;  %v27_v12 = vld [vmem:[%s670_s0 + $0x60] sm:$0xff]  ;;  %v20_v13 = vld [vmem:[%s670_s0 + $0x28] sm:$0xff]  ;;  %v21_v15 = vld [vmem:[%s670_s0 + $0x30] sm:$0xff]  ;;  %v36_v20 = vshrl.u32 %v35_v19, 7 }
   0x9   :  { %170 = vmatprep.mubr.f32.mxu0 %v509_v4  ;;  %218 = vmatprep.mubr.f32.mxu1 %v509_v4  ;;  %v28_v14 = vld [vmem:[%s670_s0 + $0x68] sm:$0xff]  ;;  %v29_v16 = vld [vmem:[%s670_s0 + $0x70] sm:$0xff]  ;;  %v22_v17 = vld [vmem:[%s670_s0 + $0x38] sm:$0xff] }
   0xa   :  { %v30_v18 = vld [vmem:[%s670_s0 + $0x78] sm:$0xff]  ;;  %v37_v21 = vsub.s32 0, %v36_v20  ;;  %v33_v22 = vld [vmem:[%s672_s2] sm:$0x3]  ;;  %v41_v23 = vsub.s32 1, %v36_v20  ;;  %s510_s0 = smov [#allocation2]  }
   0xb   :  { %s388_s2 = sshll.u32 %s510_s0, 4  ;;  %s389_s2 = int_to_ptr.vmem [resolvable:$true] %s388_s2 }
   0xc   :  { %401 = vmatmul.mubr.msk.f32.gmra.mrb[4].mxu0 %vm45_vm0, %v17_v7  ;;  %409 = vmatmul.mubr.msk.f32.gmra.mrb[4].mxu1 %vm45_vm0, %v25_v8  ;;  %v606_v24 = vrot.slane %v33_v22, %v37_v21  ;;  %v608_v25 = vrot.slane %v33_v22, %v41_v23  ;;  %s485_s21 = scalar_lea.vmem %s389_s2, 4096  ;;  %p490_p1 = scmp.lt.s32.totalorder %s389_s2, %s389_s2 }
   0xd   :  { %176 = vmatprep.mubr.f32.mxu0 %v509_v4  ;;  %224 = vmatprep.mubr.f32.mxu1 %v509_v4  ;;  %p486_p0 = scmp.ne.s32.totalorder %s389_s2, %s485_s21  ;;  %p491_p2 = scmp.lt.s32.totalorder %s485_s21, %s485_s21 }
   0xf   :  { %p492_p3 = por %p491_p2, %p490_p1 }
  0x10   :  { %402 = vmatmul.mubr.msk.f32.gmra.mrb[6].mxu0 %vm45_vm0, %v18_v9  ;;  %410 = vmatmul.mubr.msk.f32.gmra.mrb[6].mxu1 %vm45_vm0, %v26_v10 }
  0x11   :  { %182 = vmatprep.mubr.f32.mxu0 %v509_v4  ;;  %230 = vmatprep.mubr.f32.mxu1 %v509_v4  ;;  %p493_p4 = pnand %p492_p3, %p486_p0 }
  0x14   :  { %403 = vmatmul.mubr.msk.f32.gmra.mrb[8].mxu0 %vm45_vm0, %v19_v11  ;;  %411 = vmatmul.mubr.msk.f32.gmra.mrb[8].mxu1 %vm45_vm0, %v27_v12 }
  0x15   :  { %188 = vmatprep.mubr.f32.mxu0 %v509_v4  ;;  %236 = vmatprep.mubr.f32.mxu1 %v509_v4 }
  0x18   :  { %404 = vmatmul.mubr.msk.f32.gmra.mrb[10].mxu0 %vm45_vm0, %v20_v13  ;;  %412 = vmatmul.mubr.msk.f32.gmra.mrb[10].mxu1 %vm45_vm0, %v28_v14 }
  0x19   :  { %194 = vmatprep.mubr.f32.mxu0 %v509_v4  ;;  %242 = vmatprep.mubr.f32.mxu1 %v509_v4 }
  0x1c   :  { %405 = vmatmul.mubr.msk.f32.gmra.mrb[12].mxu0 %vm45_vm0, %v21_v15  ;;  %413 = vmatmul.mubr.msk.f32.gmra.mrb[12].mxu1 %vm45_vm0, %v29_v16 }
  0x1d   :  { %200 = vmatprep.mubr.f32.mxu0 %v509_v4  ;;  %248 = vmatprep.mubr.f32.mxu1 %v509_v4 }
  0x20   :  { %406 = vmatmul.mubr.msk.f32.gmra.mrb[14].mxu0 %vm45_vm0, %v22_v17  ;;  %414 = vmatmul.mubr.msk.f32.gmra.mrb[14].mxu1 %vm45_vm0, %v30_v18 }
  0xd7   :  { %v160_v26 = vpop.f32.mrb[0].mxu0  ;;  %v208_v27 = vpop.f32.mrb[0].mxu1 }
  0xd8   :  { %v161_v28 = vadd.f32 %v160_v26, %v606_v24  ;;  %v209_v29 = vadd.f32 %v208_v27, %v606_v24  ;;  %v162_v30 = vpop.f32.mrb[1].mxu0  ;;  %v210_v31 = vpop.f32.mrb[1].mxu1 }
  0xd9   :  { %v163_v32 = vadd.f32 %v162_v30, %v608_v25  ;;  %v211_v33 = vadd.f32 %v210_v31, %v608_v25 }
  0xda   :  { %255 = vst [vmem:[#allocation2] sm:$0xff] %v161_v28  ;;  %263 = vst [vmem:[#allocation2 + $0x80] sm:$0xff] %v209_v29 }
  0xdb   :  { %v271_v34 = vsub.f32 0.0, %v163_v32  ;;  %v279_v35 = vsub.f32 0.0, %v211_v33  ;;  %v166_v36 = vpop.f32.mrb[2].mxu0  ;;  %v214_v37 = vpop.f32.mrb[2].mxu1 }
  0xdc   :  { %v167_v38 = vadd.f32 %v166_v36, %v606_v24  ;;  %v215_v39 = vadd.f32 %v214_v37, %v606_v24  ;;  %v168_v40 = vpop.f32.mrb[3].mxu0  ;;  %v216_v41 = vpop.f32.mrb[3].mxu1 }
  0xdd   :  { %v287_v42 = vmul.f32 1.442695, %v271_v34  ;;  %v303_v43 = vmul.f32 1.442695, %v279_v35  ;;  %v169_v44 = vadd.f32 %v168_v40, %v608_v25  ;;  %v217_v45 = vadd.f32 %v216_v41, %v608_v25 }
  0xde   :  { %256 = vst [vmem:[#allocation2 + $0x10] sm:$0xff] %v167_v38  ;;  %264 = vst [vmem:[#allocation2 + $0x90] sm:$0xff] %v215_v39 }
  0xdf   :  { %421 = vpow2.f32 %v287_v42  ;;  %v272_v46 = vsub.f32 0.0, %v169_v44  ;;  %v280_v47 = vsub.f32 0.0, %v217_v45  ;;  %v172_v48 = vpop.f32.mrb[4].mxu0  ;;  %v220_v49 = vpop.f32.mrb[4].mxu1 }
  0xe0   :  { %423 = vpow2.f32 %v303_v43  ;;  %v173_v50 = vadd.f32 %v172_v48, %v606_v24  ;;  %v221_v51 = vadd.f32 %v220_v49, %v606_v24  ;;  %v174_v52 = vpop.f32.mrb[5].mxu0  ;;  %v222_v53 = vpop.f32.mrb[5].mxu1 }
  0xe1   :  { %v289_v54 = vmul.f32 1.442695, %v272_v46  ;;  %v305_v55 = vmul.f32 1.442695, %v280_v47  ;;  %v175_v56 = vadd.f32 %v174_v52, %v608_v25  ;;  %v223_v57 = vadd.f32 %v222_v53, %v608_v25 }
  0xe2   :  { %257 = vst [vmem:[#allocation2 + $0x20] sm:$0xff] %v173_v50  ;;  %265 = vst [vmem:[#allocation2 + $0xa0] sm:$0xff] %v221_v51 }
  0xe3   :  { %425 = vpow2.f32 %v289_v54  ;;  %v273_v58 = vsub.f32 0.0, %v175_v56  ;;  %v281_v59 = vsub.f32 0.0, %v223_v57  ;;  %v178_v60 = vpop.f32.mrb[6].mxu0  ;;  %v226_v61 = vpop.f32.mrb[6].mxu1 }
  0xe4   :  { %427 = vpow2.f32 %v305_v55  ;;  %v179_v62 = vadd.f32 %v178_v60, %v606_v24  ;;  %v227_v63 = vadd.f32 %v226_v61, %v606_v24  ;;  %v180_v0 = vpop.f32.mrb[7].mxu0  ;;  %v228_v1 = vpop.f32.mrb[7].mxu1 }
  0xe5   :  { %v291_v2 = vmul.f32 1.442695, %v273_v58  ;;  %v307_v3 = vmul.f32 1.442695, %v281_v59  ;;  %v181_v4 = vadd.f32 %v180_v0, %v608_v25  ;;  %v229_v5 = vadd.f32 %v228_v1, %v608_v25 }
  0xe6   :  { %258 = vst [vmem:[#allocation2 + $0x30] sm:$0xff] %v179_v62  ;;  %266 = vst [vmem:[#allocation2 + $0xb0] sm:$0xff] %v227_v63 }
  0xe7   :  { %429 = vpow2.f32 %v291_v2  ;;  %v274_v6 = vsub.f32 0.0, %v181_v4  ;;  %v282_v7 = vsub.f32 0.0, %v229_v5  ;;  %v184_v8 = vpop.f32.mrb[8].mxu0  ;;  %v232_v9 = vpop.f32.mrb[8].mxu1 }
  0xe8   :  { %431 = vpow2.f32 %v307_v3  ;;  %v185_v10 = vadd.f32 %v184_v8, %v606_v24  ;;  %v233_v11 = vadd.f32 %v232_v9, %v606_v24  ;;  %v186_v12 = vpop.f32.mrb[9].mxu0  ;;  %v234_v13 = vpop.f32.mrb[9].mxu1 }
  0xe9   :  { %v422_v14 = vpop.eup %421  ;;  %v293_v15 = vmul.f32 1.442695, %v274_v6  ;;  %v187_v16 = vadd.f32 %v186_v12, %v608_v25  ;;  %v235_v17 = vadd.f32 %v234_v13, %v608_v25  ;;  %v309_v20 = vmul.f32 1.442695, %v282_v7 }
  0xea   :  { %v424_v18 = vpop.eup %423  ;;  %v319_v19 = vadd.f32 1.0, %v422_v14  ;;  %259 = vst [vmem:[#allocation2 + $0x40] sm:$0xff] %v185_v10  ;;  %267 = vst [vmem:[#allocation2 + $0xc0] sm:$0xff] %v233_v11 }
  0xeb   :  { %v327_v21 = vadd.f32 1.0, %v424_v18  ;;  %433 = vpow2.f32 %v293_v15  ;;  %v275_v22 = vsub.f32 0.0, %v187_v16  ;;  %v283_v23 = vsub.f32 0.0, %v235_v17  ;;  %v190_v26 = vpop.f32.mrb[10].mxu0  ;;  %v238_v27 = vpop.f32.mrb[10].mxu1 }
  0xec   :  { %435 = vrcp.f32 %v319_v19  ;;  %v191_v28 = vadd.f32 %v190_v26, %v606_v24  ;;  %v239_v29 = vadd.f32 %v238_v27, %v606_v24  ;;  %v192_v30 = vpop.f32.mrb[11].mxu0  ;;  %v240_v31 = vpop.f32.mrb[11].mxu1 }
  0xed   :  { %v426_v32 = vpop.eup %425  ;;  %437 = vrcp.f32 %v327_v21  ;;  %v295_v33 = vmul.f32 1.442695, %v275_v22  ;;  %v193_v34 = vadd.f32 %v192_v30, %v608_v25  ;;  %v311_v37 = vmul.f32 1.442695, %v283_v23 }
  0xee   :  { %v428_v35 = vpop.eup %427  ;;  %v320_v36 = vadd.f32 1.0, %v426_v32  ;;  %439 = vpow2.f32 %v309_v20  ;;  %260 = vst [vmem:[#allocation2 + $0x50] sm:$0xff] %v191_v28  ;;  %268 = vst [vmem:[#allocation2 + $0xd0] sm:$0xff] %v239_v29  ;;  %v241_v38 = vadd.f32 %v240_v31, %v608_v25 }
  0xef   :  { %v328_v39 = vadd.f32 1.0, %v428_v35  ;;  %441 = vpow2.f32 %v295_v33  ;;  %v276_v40 = vsub.f32 0.0, %v193_v34  ;;  %v196_v41 = vpop.f32.mrb[12].mxu0  ;;  %v244_v42 = vpop.f32.mrb[12].mxu1 }
  0xf0   :  { %443 = vrcp.f32 %v320_v36  ;;  %v284_v43 = vsub.f32 0.0, %v241_v38  ;;  %v197_v44 = vadd.f32 %v196_v41, %v606_v24  ;;  %v245_v45 = vadd.f32 %v244_v42, %v606_v24  ;;  %v198_v46 = vpop.f32.mrb[13].mxu0  ;;  %v246_v47 = vpop.f32.mrb[13].mxu1 }
  0xf1   :  { %v430_v48 = vpop.eup %429  ;;  %445 = vrcp.f32 %v328_v39  ;;  %v297_v49 = vmul.f32 1.442695, %v276_v40  ;;  %v199_v50 = vadd.f32 %v198_v46, %v608_v25  ;;  %v247_v51 = vadd.f32 %v246_v47, %v608_v25 }
  0xf2   :  { %v432_v52 = vpop.eup %431  ;;  %v321_v53 = vadd.f32 1.0, %v430_v48  ;;  %447 = vpow2.f32 %v311_v37  ;;  %v313_v54 = vmul.f32 1.442695, %v284_v43  ;;  %261 = vst [vmem:[#allocation2 + $0x60] sm:$0xff] %v197_v44  ;;  %269 = vst [vmem:[#allocation2 + $0xe0] sm:$0xff] %v245_v45 }
  0xf3   :  { %v329_v55 = vadd.f32 1.0, %v432_v52  ;;  %449 = vpow2.f32 %v297_v49  ;;  %v277_v56 = vsub.f32 0.0, %v199_v50  ;;  %v285_v57 = vsub.f32 0.0, %v247_v51  ;;  %v202_v58 = vpop.f32.mrb[14].mxu0  ;;  %v250_v59 = vpop.f32.mrb[14].mxu1 }
  0xf4   :  { %451 = vrcp.f32 %v321_v53  ;;  %v203_v60 = vadd.f32 %v202_v58, %v606_v24  ;;  %v251_v61 = vadd.f32 %v250_v59, %v606_v24  ;;  %v204_v62 = vpop.f32.mrb[15].mxu0  ;;  %v252_v63 = vpop.f32.mrb[15].mxu1 }
  0xf5   :  { %v434_v0 = vpop.eup %433  ;;  %453 = vrcp.f32 %v329_v55  ;;  %v299_v1 = vmul.f32 1.442695, %v277_v56  ;;  %v315_v2 = vmul.f32 1.442695, %v285_v57  ;;  %v205_v3 = vadd.f32 %v204_v62, %v608_v25 }
  0xf6   :  { %v436_v4 = vpop.eup %435  ;;  %v322_v5 = vadd.f32 1.0, %v434_v0  ;;  %455 = vpow2.f32 %v313_v54  ;;  %262 = vst [vmem:[#allocation2 + $0x70] sm:$0xff] %v203_v60  ;;  %270 = vst [vmem:[#allocation2 + $0xf0] sm:$0xff] %v251_v61  ;;  %v253_v6 = vadd.f32 %v252_v63, %v608_v25 }
  0xf7   :  { %v438_v7 = vpop.eup %437  ;;  %367 = vst.msk [vmem:[#allocation2 + $0x8] sm:$0xff] %vm45_vm0, %v436_v4  ;;  %457 = vpow2.f32 %v299_v1  ;;  %v278_v24 = vsub.f32 0.0, %v205_v3 }
  0xf8   :  { %v440_v8 = vpop.eup %439  ;;  %375 = vst.msk [vmem:[#allocation2 + $0x88] sm:$0xff] %vm45_vm0, %v438_v7  ;;  %459 = vrcp.f32 %v322_v5  ;;  %v286_v9 = vsub.f32 0.0, %v253_v6 }
  0xf9   :  { %v442_v10 = vpop.eup %441  ;;  %v330_v11 = vadd.f32 1.0, %v440_v8  ;;  %461 = vpow2.f32 %v315_v2  ;;  %v301_v12 = vmul.f32 1.442695, %v278_v24 }
  0xfa   :  { %v444_v13 = vpop.eup %443  ;;  %v323_v14 = vadd.f32 1.0, %v442_v10  ;;  %v317_v15 = vmul.f32 1.442695, %v286_v9 }
  0xfb   :  { %v446_v16 = vpop.eup %445  ;;  %368 = vst.msk [vmem:[#allocation2 + $0x18] sm:$0xff] %vm45_vm0, %v444_v13  ;;  %463 = vrcp.f32 %v330_v11 }
  0xfc   :  { %v448_v25 = vpop.eup %447  ;;  %376 = vst.msk [vmem:[#allocation2 + $0x98] sm:$0xff] %vm45_vm0, %v446_v16  ;;  %465 = vrcp.f32 %v323_v14 }
  0xfd   :  { %v450_v17 = vpop.eup %449  ;;  %v331_v18 = vadd.f32 1.0, %v448_v25  ;;  %467 = vpow2.f32 %v301_v12 }
  0xfe   :  { %v452_v19 = vpop.eup %451  ;;  %v324_v20 = vadd.f32 1.0, %v450_v17  ;;  %469 = vpow2.f32 %v317_v15 }
  0xff   :  { %v454_v21 = vpop.eup %453  ;;  %369 = vst.msk [vmem:[#allocation2 + $0x28] sm:$0xff] %vm45_vm0, %v452_v19  ;;  %471 = vrcp.f32 %v331_v18 }
 0x100   :  { %v456_v22 = vpop.eup %455  ;;  %377 = vst.msk [vmem:[#allocation2 + $0xa8] sm:$0xff] %vm45_vm0, %v454_v21  ;;  %473 = vrcp.f32 %v324_v20 }
 0x101   :  { %v458_v23 = vpop.eup %457  ;;  %v332_v26 = vadd.f32 1.0, %v456_v22 }
 0x102   :  { %v460_v27 = vpop.eup %459  ;;  %v325_v28 = vadd.f32 1.0, %v458_v23 }
 0x103   :  { %v462_v29 = vpop.eup %461  ;;  %370 = vst.msk [vmem:[#allocation2 + $0x38] sm:$0xff] %vm45_vm0, %v460_v27  ;;  %475 = vrcp.f32 %v332_v26 }
 0x104   :  { %477 = vrcp.f32 %v325_v28  ;;  %v333_v30 = vadd.f32 1.0, %v462_v29 }
 0x105   :  { %v464_v31 = vpop.eup %463 }
 0x106   :  { %v466_v32 = vpop.eup %465  ;;  %378 = vst.msk [vmem:[#allocation2 + $0xb8] sm:$0xff] %vm45_vm0, %v464_v31  ;;  %479 = vrcp.f32 %v333_v30 }
 0x107   :  { %v468_v33 = vpop.eup %467  ;;  %371 = vst.msk [vmem:[#allocation2 + $0x48] sm:$0xff] %vm45_vm0, %v466_v32 }
 0x108   :  { %v470_v34 = vpop.eup %469  ;;  %v326_v35 = vadd.f32 1.0, %v468_v33 }
 0x109   :  { %v472_v36 = vpop.eup %471  ;;  %v334_v37 = vadd.f32 1.0, %v470_v34 }
 0x10a   :  { %v474_v38 = vpop.eup %473  ;;  %379 = vst.msk [vmem:[#allocation2 + $0xc8] sm:$0xff] %vm45_vm0, %v472_v36  ;;  %481 = vrcp.f32 %v326_v35 }
 0x10b   :  { %372 = vst.msk [vmem:[#allocation2 + $0x58] sm:$0xff] %vm45_vm0, %v474_v38  ;;  %483 = vrcp.f32 %v334_v37 }
 0x10d   :  { %v476_v39 = vpop.eup %475 }
 0x10e   :  { %v478_v40 = vpop.eup %477  ;;  %380 = vst.msk [vmem:[#allocation2 + $0xd8] sm:$0xff] %vm45_vm0, %v476_v39 }
 0x10f   :  { %373 = vst.msk [vmem:[#allocation2 + $0x68] sm:$0xff] %vm45_vm0, %v478_v40 }
 0x110   :  { %v480_v41 = vpop.eup %479 }
 0x111   :  { %381 = vst.msk [vmem:[#allocation2 + $0xe8] sm:$0xff] %vm45_vm0, %v480_v41 }
 0x114   :  { %v482_v42 = vpop.eup %481 }
 0x115   :  { %v484_v43 = vpop.eup %483  ;;  %374 = vst.msk [vmem:[#allocation2 + $0x78] sm:$0xff] %vm45_vm0, %v482_v42 }
 0x116   :  { %382 = vst.msk [vmem:[#allocation2 + $0xf8] sm:$0xff] %vm45_vm0, %v484_v43 }
 0x117   :  { %496 = shalt.err (!%p493_p4)
}
 0x118   :  { %s497_s24 = scalar_lea.hbm %s673_s3, 4096 }
 0x119   :  { %p498_p5 = scmp.ne.s32.totalorder %s673_s3, %s497_s24  ;;  %p501_p6 = scmp.lt.u32.totalorder %s497_s24, %s673_s3 }
 0x11b   :  { %p503_p7 = pnand %p501_p6, %p498_p5 }
 0x11d   :  { %506 = shalt.err (!%p503_p7)
}
 0x11e   :  { %s511_s29 = smov 256   ;;  %s512_s30 = smov 16  }
 0x11f   :  { %394 = dma.vmem_to_hbm [thread:$0]  %s389_s2, 4096, %s673_s3, [#allocation3], %s511_s29, %s511_s29, %s512_s30  }
 0x120   :  { %507 = dma.done.wait [#allocation3], 4096  }
 0x121   :  { %508 = vsyncadd [#allocation3], 4294963200 }
 0x122   :  { %398 = vsyncpa [#allocation3], 1 }

</bundles_post_ra>
